<compile_context>
chip_gen: v5e
topology: v5e:2x2
jax: 0.10.0
libtpu: 0.0.40
codegen_flags: <defaults>
</compile_context>

<pallas_src>
import functools

import jax
import jax.numpy as jnp
from jax.experimental import pallas as pl
from jax.experimental.pallas import tpu as pltpu


# ----------------------------- Pallas kernel --------------------------------
def _gather_rows_kernel(ids_ref, w_hbm, o_ref, sem, *, block_tokens):
    """Gather `block_tokens` rows of the HBM table into the output block.

    ids_ref: SMEM int32 [Mp]          (scalar-prefetched token ids)
    w_hbm:   HBM  [V, D]              (memory_space=pl.ANY, manual DMA)
    o_ref:   VMEM [block_tokens, D]   (pipelined output block, DMA target)
    sem:     shared DMA semaphore
    """
    base = pl.program_id(0) * block_tokens

    # Issue all row DMAs for this block; they stay in flight together and
    # land directly in the pipelined output block.
    @pl.loop(0, block_tokens)
    def _(t):
        row = ids_ref[base + t]
        pltpu.make_async_copy(
            w_hbm.at[pl.ds(row, 1), :], o_ref.at[pl.ds(t, 1), :], sem
        ).start()

    # Drain.  Every copy has the identical (1, D) shape, so waiting
    # block_tokens times on the shared semaphore accounts for all of them;
    # the output block is only handed to the writeback pipeline after every
    # wait has completed.
    @pl.loop(0, block_tokens)
    def _(t):
        pltpu.make_async_copy(
            w_hbm.at[pl.ds(0, 1), :], o_ref.at[pl.ds(t, 1), :], sem
        ).wait()


# ------------------------------- Wrapper -------------------------------------
def parallel_embedding(input_ids, weight, *, block_tokens=256):
    """Forward of ParallelEmbedding at tensor_model_parallel_size == 1.

    input_ids: integer array of any shape, values in [0, num_embeddings)
    weight:    [num_embeddings, embedding_dim]
    returns    input_ids.shape + [embedding_dim], dtype = weight.dtype
    """
    orig_shape = input_ids.shape
    ids = input_ids.reshape(-1).astype(jnp.int32)
    M = ids.shape[0]
    _, D = weight.shape
    itemsize = jnp.dtype(weight.dtype).itemsize

    # Token-block size: multiple of 8 (sublane constraint on the output
    # block), capped so the double-buffered output block stays <= ~8 MiB,
    # and no larger than needed for small inputs.
    rows_by_vmem = max(8, (4 * 1024 * 1024) // max(1, D * itemsize))
    tb = min(block_tokens, rows_by_vmem)
    tb = max(8, (tb // 8) * 8)
    tb = min(tb, ((M + 7) // 8) * 8)
    Mp = ((M + tb - 1) // tb) * tb
    if Mp != M:
        # Pad only the tiny id vector; padded slots gather row 0 (always a
        # valid index) and are sliced off below.
        ids = jnp.pad(ids, (0, Mp - M))

    kernel = functools.partial(_gather_rows_kernel, block_tokens=tb)

    out = pl.pallas_call(
        kernel,
        out_shape=jax.ShapeDtypeStruct((Mp, D), weight.dtype),
        grid_spec=pltpu.PrefetchScalarGridSpec(
            num_scalar_prefetch=1,                         # ids -> SMEM
            grid=(Mp // tb,),
            in_specs=[pl.BlockSpec(memory_space=pl.ANY)],  # table stays in HBM
            out_specs=pl.BlockSpec((tb, D), lambda i, ids_sref: (i, 0)),
            scratch_shapes=[pltpu.SemaphoreType.DMA],
        ),
        compiler_params=pltpu.CompilerParams(
            dimension_semantics=("parallel",),  # blocks independent -> megacore
            vmem_limit_bytes=64 * 1024 * 1024,
        ),
    )(ids, weight)

    if Mp != M:
        out = out[:M]
    return out.reshape(*orig_shape, D)


# ------------------------------- Demo / test ----------------------------------
if __name__ == "__main__":
    # Small shapes consistent with the module: token ids [batch, seq] into a
    # [num_embeddings, embedding_dim] table.
    B, S = 2, 8
    V, D = 64, 32

    key = jax.random.PRNGKey(0)
    k_w, k_ids, k_ids2 = jax.random.split(key, 3)

    # Default init_method is torch.nn.init.normal_ (mean 0, std 1).
    weight = jax.random.normal(k_w, (V, D), dtype=jnp.float32)
    input_ids = jax.random.randint(k_ids, (B, S), 0, V, dtype=jnp.int32)

    out = parallel_embedding(input_ids, weight)
    out = jax.block_until_ready(out)

    ref = jnp.take(weight, input_ids, axis=0)
    assert out.shape == (B, S, D)
    assert jnp.array_equal(out, ref), "mismatch vs reference embedding lookup"

    # Also exercise the ragged-tail path (token count not a multiple of the
    # token block / sublane width).
    ids2 = jax.random.randint(k_ids2, (5,), 0, V, dtype=jnp.int32)
    out2 = jax.block_until_ready(parallel_embedding(ids2, weight))
    assert jnp.array_equal(out2, jnp.take(weight, ids2, axis=0))

    print("KERNEL_OK")
</pallas_src>

<mosaic_0001>
module attributes {stable_mosaic.version = 11 : i64} {
  func.func @_gather_rows_kernel(%arg0: i32, %arg1: memref<16xi32, #tpu.memory_space<smem>>, %arg2: memref<64x32xf32, #tpu.memory_space<any>>, %arg3: memref<16x32xf32, #tpu.memory_space<vmem>>, %arg4: memref<!tpu.dma_semaphore, #tpu.memory_space<semaphore_mem>>) attributes {dimension_semantics = [#tpu.dimension_semantics<parallel>], iteration_bounds = array<i64: 1>, scalar_prefetch = 1 : i64, scratch_operands = 1 : i64, tpu.core_type = #tpu.core_type<tc>, window_params = [{}, {transform_indices = @transform_1, window_bounds = array<i64: 16, 32>}]} {
    %c16_i32 = arith.constant 16 : i32
    %0 = arith.muli %arg0, %c16_i32 : i32
    %c0_i32 = arith.constant 0 : i32
    %c16_i32_0 = arith.constant 16 : i32
    %1 = arith.addi %c0_i32, %c16_i32_0 : i32
    %c1_i32 = arith.constant 1 : i32
    scf.for %arg5 = %c0_i32 to %1 step %c1_i32  : i32 {
      %c1_i32_6 = arith.constant 1 : i32
      %3 = arith.muli %arg5, %c1_i32_6 : i32
      %c0_i32_7 = arith.constant 0 : i32
      %4 = arith.addi %c0_i32_7, %3 : i32
      %5 = arith.addi %0, %4 : i32
      %6 = arith.index_cast %5 : i32 to index
      %7 = memref.load %arg1[%6] : memref<16xi32, #tpu.memory_space<smem>>
      %c0_i32_8 = arith.constant 0 : i32
      %8 = tpu.memref_slice %arg2[%7, %c0_i32_8] : memref<64x32xf32, #tpu.memory_space<any>> -> memref<1x32xf32, #tpu.memory_space<any>>
      %c0_i32_9 = arith.constant 0 : i32
      %9 = tpu.memref_slice %arg3[%4, %c0_i32_9] : memref<16x32xf32, #tpu.memory_space<vmem>> -> memref<1x32xf32, #tpu.memory_space<vmem>>
      tpu.enqueue_dma source(%8 : memref<1x32xf32, #tpu.memory_space<any>>) target(%9 : memref<1x32xf32, #tpu.memory_space<vmem>>) target_semaphore(%arg4 : memref<!tpu.dma_semaphore, #tpu.memory_space<semaphore_mem>>)
    }
    %c16_i32_1 = arith.constant 16 : i32
    %c0_i32_2 = arith.constant 0 : i32
    %c16_i32_3 = arith.constant 16 : i32
    %2 = arith.addi %c0_i32_2, %c16_i32_3 : i32
    %c1_i32_4 = arith.constant 1 : i32
    scf.for %arg5 = %c0_i32_2 to %2 step %c1_i32_4  : i32 {
      %c1_i32_6 = arith.constant 1 : i32
      %3 = arith.muli %arg5, %c1_i32_6 : i32
      %c0_i32_7 = arith.constant 0 : i32
      %4 = arith.addi %c0_i32_7, %3 : i32
      %c0_i32_8 = arith.constant 0 : i32
      %c0_i32_9 = arith.constant 0 : i32
      %5 = tpu.memref_slice %arg2[%c0_i32_8, %c0_i32_9] : memref<64x32xf32, #tpu.memory_space<any>> -> memref<1x32xf32, #tpu.memory_space<any>>
      %c0_i32_10 = arith.constant 0 : i32
      %6 = tpu.memref_slice %arg3[%4, %c0_i32_10] : memref<16x32xf32, #tpu.memory_space<vmem>> -> memref<1x32xf32, #tpu.memory_space<vmem>>
      tpu.wait_dma2 semaphore(%arg4 : memref<!tpu.dma_semaphore, #tpu.memory_space<semaphore_mem>>) src(%5 : memref<1x32xf32, #tpu.memory_space<any>>) dst(%6 : memref<1x32xf32, #tpu.memory_space<vmem>>)
    }
    %c16_i32_5 = arith.constant 16 : i32
    return
  }
  func.func @transform_1(%arg0: i32, %arg1: memref<16xi32, #tpu.memory_space<smem>>) -> (i32, i32) {
    %c0_i32 = arith.constant 0 : i32
    %c0_i32_0 = arith.constant 0 : i32
    return %arg0, %c0_i32 : i32, i32
  }
}

</mosaic_0001>

<bundles_post_ra>
// kernel: tpu_custom_call.1
= control target key start
LH: loop header
LB: loop body
LE: loop exit
PB: predicated region body
PF: predicated region fallthrough
CT: control target
= control target key end

     0   :  { %s189_s12 = smov [#allocation4]   ;;  %s217_s0 = inlined_call_operand.vmem [shape: s32[16], index: 0, kind: input, shape index: {}]   ;;  %s218_s1 = inlined_call_operand.vmem [shape: f32[64,32], index: 1, kind: input, shape index: {}]   ;;  %s219_s2 = inlined_call_operand.hbm [shape: f32[16,32], index: 2, kind: output, shape index: {}]  }
   0x1   :  { %s8_s11 = sshll.u32 %s217_s0, 4  ;;  %s9_s11 = int_to_ptr.vmem [resolvable:$true] %s8_s11 }
   0x2   :  { %11 = dma.vmem_to_smem %s9_s11, 16, %s189_s12, [#allocation3] }
   0x3   :  { %175 = dma.done.wait [#allocation3], 16 }
   0x4   :  { %176 = vsyncadd [#allocation3], 4294967280 }
   0x5   :  { %14 = sfence }
   0x6   :  { %15 = vsyncpa [#allocation6], 0  ;;  %s181_s13 = smov 0  }
   0x7 LB: > { %s24_s14 = sld [smem:[#allocation4 + %s183_s13]]  ;;  %s26_s18 = scalar_lea.vmem [#allocation5], %s183_s13  ;;  %s183_s13 = sphi %s181_s13, %s22_s13  }
   0xd   : > { %s25_s17 = scalar_lea.vmem %s218_s1, %s24_s14 }
   0xe   : > { %v41_v0 = vld [vmem:[%s25_s17] sm:$0x1] }
   0xf   : > { %42 = vst [vmem:[%s26_s18] sm:$0x1] %v41_v0 }
  0x10   : > { %60 = vsyncadd [#allocation2], 16  ;;  %s22_s13 = sadd.s32 1, %s183_s13  }
  0x11   : > { %p19_p0 = scmp.ge.s32.totalorder %s22_s13, 16  }
  0x12   :  { %s185_s0 = smov (%p19_p0), 0  }
  0x13   :  { %21 = sbr.rel (!%p19_p0) target bundleno = 7 (0x7), region = 70 }
  0x18 LB: > { %177 = dma.done.wait [#allocation2], 16  ;;  %s187_s0 = sphi %s185_s0, %s66_s0  }
  0x19   : > { %178 = vsyncadd [#allocation2], 4294967280  ;;  %s66_s0 = sadd.s32 1, %s187_s0  }
  0x1a   : > { %p63_p1 = scmp.ge.s32.totalorder %s66_s0, 16  }
  0x1b   :  { %s76_s21 = sshll.u32 (%p63_p1), %s219_s2, 4  ;;  %s190_s22 = smov (%p63_p1), [#allocation5]   ;;  %s77_s21 = int_to_ptr.hbm [resolvable:$true] %s76_s21 }
  0x1c   :  { %65 = sbr.rel (!%p63_p1) target bundleno = 24 (0x18), region = 81  ;;  %s74_s23 = sshll.u32 (%p63_p1), %s190_s22, 4  ;;  %s75_s23 = int_to_ptr.vmem [resolvable:$true] %s74_s23 }
  0x1d   :  { %s191_s24 = smov (%p63_p1), 128   ;;  %s192_s25 = smov (%p63_p1), 8  }
  0x1e   :  { %82 = dma.vmem_to_hbm [thread:$0]  (%p63_p1), %s75_s23, 256, %s77_s21, [#allocation6], %s191_s24, %s191_s24, %s192_s25  }
  0x21   :  { %179 = dma.done.wait [#allocation6], 256  }
  0x22   :  { %180 = vsyncadd [#allocation6], 4294967040 }
  0x23   :  { %87 = vsyncpa [#allocation6], 1 }
  0x24   :  { %88 = vsyncmov [#allocation2] }
  0x27   :  { %s89_s1 = vpop.sfrf %88 }
  0x28   :  { %p110_p2 = scmp.ne.s32.totalorder %s89_s1, 0 }
  0x2a   :  { %93 = shalt.err (%p110_p2)  }

</bundles_post_ra>
